<compile_context>
chip_gen: v7x
topology: tpu7x:2x2x1
jax: 0.10.0
libtpu: 0.0.40
codegen_flags: <defaults>
</compile_context>

<pallas_src>
import functools
import math

import jax
import jax.numpy as jnp
from jax.experimental import pallas as pl
from jax.experimental.pallas import tpu as pltpu


def action_decoder_kernel(x_ref, qt_ref, wkv_ref, bkv_ref, out_ref, *, num_heads):
    B, S, D = x_ref.shape
    A = qt_ref.shape[1]
    hd = D // num_heads

    # Packed projection: [ K-proj | folded-V-proj (H cols) | zero pad ] in one
    # MXU push, bf16 inputs, f32 accumulation.
    x2 = x_ref[...].reshape(B * S, D).astype(jnp.bfloat16)
    kv = jnp.dot(x2, wkv_ref[...], preferred_element_type=jnp.float32) + bkv_ref[...]
    kb = kv[:, :D].astype(jnp.bfloat16)                       # (B*S, D) keys
    vproj = kv[:, D:D + num_heads].reshape(B, S, num_heads)   # (B, S, H) f32

    qt = qt_ref[...]                                          # (D, A) bf16, pre-scaled q^T

    scores = jnp.zeros((B, A), jnp.float32)
    for h in range(num_heads):                                # static, fully unrolled (H=4)
        lo = h * hd
        # Transposed scores: (B*S, hd) @ (hd, A) -> (B, S, A), lane-dense (A = 128).
        s = jnp.dot(kb[:, lo:lo + hd], qt[lo:lo + hd, :],
                    preferred_element_type=jnp.float32).reshape(B, S, A)
        # Softmax over the key axis S (sublane axis), f32.  approx reciprocal on
        # the EUP: ~1e-3 relative deviation vs the PyTorch reference (documented).
        s = s - jnp.max(s, axis=1, keepdims=True)
        p = jnp.exp(s)
        p = p * pl.reciprocal(jnp.sum(p, axis=1, keepdims=True), approx=True)
        # PV + out_proj + output_layer pre-folded into one scalar per (b, s, h):
        # contract the attention weights against vproj over S (VPU mul + reduce).
        scores = scores + jnp.sum(p * vproj[:, :, h:h + 1], axis=1)

    # Final action probabilities: exact softmax over the A (lane) axis.
    scores = scores - jnp.max(scores, axis=-1, keepdims=True)
    e = jnp.exp(scores)
    out_ref[...] = e * pl.reciprocal(jnp.sum(e, axis=-1, keepdims=True), approx=False)
    # TODO(synk): key_padding_mask (attention_mask) path not implemented; the
    # reference default (None) is the only path exercised here.


def prepare_decoder_params(params, action_emb, *, num_heads):
    """Parameter-only precomputation (inference-time weight folding)."""
    A, D = action_emb.shape
    assert D % num_heads == 0, "token_dim must be divisible by num_heads"
    assert D % 128 == 0 and A % 128 == 0, "lane-aligned token_dim / num_action_tokens expected"
    hd = D // num_heads
    scale = 1.0 / math.sqrt(hd)

    # (1) q is a pure function of the parameters: precompute, pre-scale, transpose.
    q = (action_emb @ params["wq"] + params["bq"]) * scale               # (A, D)
    q_t = q.T.astype(jnp.bfloat16)                                       # (D, A)

    # (2) fold out_proj @ output_layer:  wo_eff = wo @ w_out^T  -> (D, 1)
    wo_eff = params["wo"] @ params["w_out"].T                            # (D, 1)

    # (3) fold the V projection through wo_eff per head -> (D, H) / (1, H)
    wv_eff = jnp.concatenate(
        [params["wv"][:, h * hd:(h + 1) * hd] @ wo_eff[h * hd:(h + 1) * hd, :]
         for h in range(num_heads)], axis=1)                             # (D, H)
    bv_eff = jnp.concatenate(
        [params["bv"][:, h * hd:(h + 1) * hd] @ wo_eff[h * hd:(h + 1) * hd, :]
         for h in range(num_heads)], axis=1)                             # (1, H)
    # out_proj bias and output-layer bias add the same constant to every action
    # score; softmax is shift-invariant, so they drop out exactly.

    # (4) pack [K-proj | folded-V-proj | zero pad] into one lane-aligned (D, 2D) weight.
    wkv = jnp.concatenate(
        [params["wk"], wv_eff, jnp.zeros((D, D - num_heads), jnp.float32)],
        axis=1).astype(jnp.bfloat16)                                     # (D, 2D) bf16
    bkv = jnp.concatenate(
        [params["bk"], bv_eff, jnp.zeros((1, D - num_heads), jnp.float32)],
        axis=1)                                                          # (1, 2D) f32

    return dict(q_t=q_t, wkv=wkv, bkv=bkv, num_heads=num_heads)


def action_token_decoder(fused_features, prepared):
    B, S, D = fused_features.shape
    Dq, A = prepared["q_t"].shape
    num_heads = int(prepared["num_heads"])
    assert D == Dq, "fused_features token_dim must match prepared parameters"

    kernel = functools.partial(action_decoder_kernel, num_heads=num_heads)
    vmem = pl.BlockSpec(memory_space=pltpu.MemorySpace.VMEM)

    flops = 2 * (B * S) * D * (2 * D)                                 # packed projection
    flops += num_heads * 2 * (B * S) * (D // num_heads) * A           # per-head QK^T
    flops += num_heads * 2 * (B * S) * A                              # folded PV contraction
    transcendentals = num_heads * B * S * A + B * A                   # exps
    bytes_accessed = (fused_features.size * 4 + prepared["q_t"].size * 2
                      + prepared["wkv"].size * 2 + prepared["bkv"].size * 4
                      + B * A * 4)

    # Gridless call: total footprint < 150 KiB so everything stays resident in
    # VMEM for the single invocation (no grid-step overhead, no weight re-DMA).
    # TODO(synk): if B (or S) grows, add a grid over B with
    # dimension_semantics=("parallel",) so v7x's two TensorCores split the batch.
    return pl.pallas_call(
        kernel,
        out_shape=jax.ShapeDtypeStruct((B, A), jnp.float32),
        in_specs=[vmem, vmem, vmem, vmem],
        out_specs=vmem,
        cost_estimate=pl.CostEstimate(
            flops=int(flops),
            transcendentals=int(transcendentals),
            bytes_accessed=int(bytes_accessed)),
    )(fused_features, prepared["q_t"], prepared["wkv"], prepared["bkv"])


def init_params(key, token_dim, num_action_tokens, scale=0.1):
    D, A = token_dim, num_action_tokens
    ks = jax.random.split(key, 11)

    def w(k, shape):
        return (scale * jax.random.normal(k, shape)).astype(jnp.float32)

    params = dict(
        wq=w(ks[0], (D, D)), wk=w(ks[1], (D, D)), wv=w(ks[2], (D, D)),
        bq=w(ks[3], (1, D)), bk=w(ks[4], (1, D)), bv=w(ks[5], (1, D)),
        wo=w(ks[6], (D, D)), bo=w(ks[7], (1, D)),
        w_out=w(ks[8], (1, D)),                 # nn.Linear(D, 1).weight layout (1, D)
        b_out=w(ks[9], (1, 1)),
    )
    action_emb = jax.random.normal(ks[10], (A, D), jnp.float32)   # ~ torch.randn
    return params, action_emb


def reference_action_probs(x, action_emb, params, *, num_heads):
    """Pure-JAX f32 reference of the PyTorch forward (unfused, unfolded)."""
    A, D = action_emb.shape
    B, S, _ = x.shape
    hd = D // num_heads
    q = (action_emb @ params["wq"] + params["bq"]) / math.sqrt(hd)        # (A, D)
    k = x @ params["wk"] + params["bk"]                                   # (B, S, D)
    v = x @ params["wv"] + params["bv"]                                   # (B, S, D)
    qh = q.reshape(A, num_heads, hd).transpose(1, 0, 2)                   # (H, A, hd)
    kh = k.reshape(B, S, num_heads, hd).transpose(0, 2, 1, 3)             # (B, H, S, hd)
    vh = v.reshape(B, S, num_heads, hd).transpose(0, 2, 1, 3)             # (B, H, S, hd)
    s = jnp.einsum('had,bhsd->bhas', qh, kh)
    p = jax.nn.softmax(s, axis=-1)
    o = jnp.einsum('bhas,bhsd->bhad', p, vh)
    attended = o.transpose(0, 2, 1, 3).reshape(B, A, D)
    attn_out = attended @ params["wo"] + params["bo"]
    scores = (attn_out @ params["w_out"].T + params["b_out"])[..., 0]     # (B, A)
    return jax.nn.softmax(scores, axis=-1)


if __name__ == "__main__":
    # small shapes consistent with the module (lane-aligned: D = A = 128)
    B, S = 2, 16
    token_dim = 128
    num_heads = 4
    num_action_tokens = 128

    key = jax.random.PRNGKey(0)
    k_x, k_p = jax.random.split(key)
    fused_features = jax.random.normal(k_x, (B, S, token_dim), jnp.float32)
    params, action_emb = init_params(k_p, token_dim, num_action_tokens)
    prepared = prepare_decoder_params(params, action_emb, num_heads=num_heads)

    probs = action_token_decoder(fused_features, prepared)
    jax.block_until_ready(probs)

    assert probs.shape == (B, num_action_tokens)
    # each row is a proper probability distribution
    assert bool(jnp.all(jnp.abs(jnp.sum(probs, axis=-1) - 1.0) < 1e-3))
    # matches the unfused / unfolded f32 reference (bf16 matmuls + approx recip
    # inside attention -> small relative tolerance)
    ref = reference_action_probs(fused_features, action_emb, params,
                                 num_heads=num_heads)
    max_err = float(jnp.max(jnp.abs(probs - ref)))
    assert bool(jnp.allclose(probs, ref, rtol=0.15, atol=1.5e-3)), f"max_err={max_err}"
    print("KERNEL_OK")
</pallas_src>

<mosaic_0001>
module attributes {stable_mosaic.version = 11 : i64} {
  func.func @action_decoder_kernel(%arg0: memref<2x16x128xf32, #tpu.memory_space<vmem>>, %arg1: memref<128x128xbf16, #tpu.memory_space<vmem>>, %arg2: memref<128x256xbf16, #tpu.memory_space<vmem>>, %arg3: memref<1x256xf32, #tpu.memory_space<vmem>>, %arg4: memref<2x128xf32, #tpu.memory_space<vmem>>) attributes {dimension_semantics = [], scalar_prefetch = 0 : i64, scratch_operands = 0 : i64, tpu.core_type = #tpu.core_type<tc>} {
    %c0 = arith.constant 0 : index
    %c0_0 = arith.constant 0 : index
    %c0_1 = arith.constant 0 : index
    %0 = vector.load %arg0[%c0, %c0_0, %c0_1] : memref<2x16x128xf32, #tpu.memory_space<vmem>>, vector<2x16x128xf32>
    %1 = vector.shape_cast %0 : vector<2x16x128xf32> to vector<32x128xf32>
    %2 = arith.truncf %1 : vector<32x128xf32> to vector<32x128xbf16>
    %c0_2 = arith.constant 0 : index
    %c0_3 = arith.constant 0 : index
    %3 = vector.load %arg2[%c0_2, %c0_3] : memref<128x256xbf16, #tpu.memory_space<vmem>>, vector<128x256xbf16>
    %cst = arith.constant dense<0.000000e+00> : vector<32x256xf32>
    %4 = tpu.matmul %2, %3, %cst {dimension_numbers = #tpu.dot_dimension_numbers<[1], [0], [0], [1], [0, 0, 1, 1], [], []>} : vector<32x128xbf16>, vector<128x256xbf16>, vector<32x256xf32> -> vector<32x256xf32>
    %c0_4 = arith.constant 0 : index
    %c0_5 = arith.constant 0 : index
    %5 = vector.load %arg3[%c0_4, %c0_5] : memref<1x256xf32, #tpu.memory_space<vmem>>, vector<1x256xf32>
    %6 = vector.broadcast %5 : vector<1x256xf32> to vector<32x256xf32>
    %7 = arith.addf %4, %6 : vector<32x256xf32>
    %8 = vector.extract_strided_slice %7 {offsets = [0, 0], sizes = [32, 128], strides = [1, 1]} : vector<32x256xf32> to vector<32x128xf32>
    %9 = arith.truncf %8 : vector<32x128xf32> to vector<32x128xbf16>
    %10 = vector.extract_strided_slice %7 {offsets = [0, 128], sizes = [32, 4], strides = [1, 1]} : vector<32x256xf32> to vector<32x4xf32>
    %11 = vector.shape_cast %10 : vector<32x4xf32> to vector<2x16x4xf32>
    %c0_6 = arith.constant 0 : index
    %c0_7 = arith.constant 0 : index
    %12 = vector.load %arg1[%c0_6, %c0_7] : memref<128x128xbf16, #tpu.memory_space<vmem>>, vector<128x128xbf16>
    %cst_8 = arith.constant 0.000000e+00 : f32
    %13 = vector.broadcast %cst_8 : f32 to vector<2x128xf32>
    %14 = vector.extract_strided_slice %9 {offsets = [0, 0], sizes = [32, 32], strides = [1, 1]} : vector<32x128xbf16> to vector<32x32xbf16>
    %15 = vector.extract_strided_slice %12 {offsets = [0, 0], sizes = [32, 128], strides = [1, 1]} : vector<128x128xbf16> to vector<32x128xbf16>
    %cst_9 = arith.constant dense<0.000000e+00> : vector<32x128xf32>
    %16 = tpu.matmul %14, %15, %cst_9 {dimension_numbers = #tpu.dot_dimension_numbers<[1], [0], [0], [1], [0, 0, 1, 1], [], []>} : vector<32x32xbf16>, vector<32x128xbf16>, vector<32x128xf32> -> vector<32x128xf32>
    %17 = vector.shape_cast %16 : vector<32x128xf32> to vector<2x16x128xf32>
    %cst_10 = arith.constant dense<0xFF800000> : vector<2x128xf32>
    %18 = vector.multi_reduction <maximumf>, %17, %cst_10 [1] : vector<2x16x128xf32> to vector<2x128xf32>
    %19 = vector.shape_cast %18 : vector<2x128xf32> to vector<2x1x128xf32>
    %20 = vector.broadcast %19 : vector<2x1x128xf32> to vector<2x16x128xf32>
    %21 = arith.subf %17, %20 : vector<2x16x128xf32>
    %22 = math.exp %21 : vector<2x16x128xf32>
    %cst_11 = arith.constant dense<0.000000e+00> : vector<2x128xf32>
    %23 = vector.multi_reduction <add>, %22, %cst_11 [1] : vector<2x16x128xf32> to vector<2x128xf32>
    %24 = vector.shape_cast %23 : vector<2x128xf32> to vector<2x1x128xf32>
    %25 = tpu.reciprocal %24 {approx = true} : vector<2x1x128xf32> -> vector<2x1x128xf32>
    %26 = vector.broadcast %25 : vector<2x1x128xf32> to vector<2x16x128xf32>
    %27 = arith.mulf %22, %26 : vector<2x16x128xf32>
    %28 = vector.extract_strided_slice %11 {offsets = [0, 0, 0], sizes = [2, 16, 1], strides = [1, 1, 1]} : vector<2x16x4xf32> to vector<2x16x1xf32>
    %29 = vector.broadcast %28 : vector<2x16x1xf32> to vector<2x16x128xf32>
    %30 = arith.mulf %27, %29 : vector<2x16x128xf32>
    %cst_12 = arith.constant dense<0.000000e+00> : vector<2x128xf32>
    %31 = vector.multi_reduction <add>, %30, %cst_12 [1] : vector<2x16x128xf32> to vector<2x128xf32>
    %32 = arith.addf %13, %31 : vector<2x128xf32>
    %33 = vector.extract_strided_slice %9 {offsets = [0, 32], sizes = [32, 32], strides = [1, 1]} : vector<32x128xbf16> to vector<32x32xbf16>
    %34 = vector.extract_strided_slice %12 {offsets = [32, 0], sizes = [32, 128], strides = [1, 1]} : vector<128x128xbf16> to vector<32x128xbf16>
    %cst_13 = arith.constant dense<0.000000e+00> : vector<32x128xf32>
    %35 = tpu.matmul %33, %34, %cst_13 {dimension_numbers = #tpu.dot_dimension_numbers<[1], [0], [0], [1], [0, 0, 1, 1], [], []>} : vector<32x32xbf16>, vector<32x128xbf16>, vector<32x128xf32> -> vector<32x128xf32>
    %36 = vector.shape_cast %35 : vector<32x128xf32> to vector<2x16x128xf32>
    %cst_14 = arith.constant dense<0xFF800000> : vector<2x128xf32>
    %37 = vector.multi_reduction <maximumf>, %36, %cst_14 [1] : vector<2x16x128xf32> to vector<2x128xf32>
    %38 = vector.shape_cast %37 : vector<2x128xf32> to vector<2x1x128xf32>
    %39 = vector.broadcast %38 : vector<2x1x128xf32> to vector<2x16x128xf32>
    %40 = arith.subf %36, %39 : vector<2x16x128xf32>
    %41 = math.exp %40 : vector<2x16x128xf32>
    %cst_15 = arith.constant dense<0.000000e+00> : vector<2x128xf32>
    %42 = vector.multi_reduction <add>, %41, %cst_15 [1] : vector<2x16x128xf32> to vector<2x128xf32>
    %43 = vector.shape_cast %42 : vector<2x128xf32> to vector<2x1x128xf32>
    %44 = tpu.reciprocal %43 {approx = true} : vector<2x1x128xf32> -> vector<2x1x128xf32>
    %45 = vector.broadcast %44 : vector<2x1x128xf32> to vector<2x16x128xf32>
    %46 = arith.mulf %41, %45 : vector<2x16x128xf32>
    %47 = vector.extract_strided_slice %11 {offsets = [0, 0, 1], sizes = [2, 16, 1], strides = [1, 1, 1]} : vector<2x16x4xf32> to vector<2x16x1xf32>
    %48 = vector.broadcast %47 : vector<2x16x1xf32> to vector<2x16x128xf32>
    %49 = arith.mulf %46, %48 : vector<2x16x128xf32>
    %cst_16 = arith.constant dense<0.000000e+00> : vector<2x128xf32>
    %50 = vector.multi_reduction <add>, %49, %cst_16 [1] : vector<2x16x128xf32> to vector<2x128xf32>
    %51 = arith.addf %32, %50 : vector<2x128xf32>
    %52 = vector.extract_strided_slice %9 {offsets = [0, 64], sizes = [32, 32], strides = [1, 1]} : vector<32x128xbf16> to vector<32x32xbf16>
    %53 = vector.extract_strided_slice %12 {offsets = [64, 0], sizes = [32, 128], strides = [1, 1]} : vector<128x128xbf16> to vector<32x128xbf16>
    %cst_17 = arith.constant dense<0.000000e+00> : vector<32x128xf32>
    %54 = tpu.matmul %52, %53, %cst_17 {dimension_numbers = #tpu.dot_dimension_numbers<[1], [0], [0], [1], [0, 0, 1, 1], [], []>} : vector<32x32xbf16>, vector<32x128xbf16>, vector<32x128xf32> -> vector<32x128xf32>
    %55 = vector.shape_cast %54 : vector<32x128xf32> to vector<2x16x128xf32>
    %cst_18 = arith.constant dense<0xFF800000> : vector<2x128xf32>
    %56 = vector.multi_reduction <maximumf>, %55, %cst_18 [1] : vector<2x16x128xf32> to vector<2x128xf32>
    %57 = vector.shape_cast %56 : vector<2x128xf32> to vector<2x1x128xf32>
    %58 = vector.broadcast %57 : vector<2x1x128xf32> to vector<2x16x128xf32>
    %59 = arith.subf %55, %58 : vector<2x16x128xf32>
    %60 = math.exp %59 : vector<2x16x128xf32>
    %cst_19 = arith.constant dense<0.000000e+00> : vector<2x128xf32>
    %61 = vector.multi_reduction <add>, %60, %cst_19 [1] : vector<2x16x128xf32> to vector<2x128xf32>
    %62 = vector.shape_cast %61 : vector<2x128xf32> to vector<2x1x128xf32>
    %63 = tpu.reciprocal %62 {approx = true} : vector<2x1x128xf32> -> vector<2x1x128xf32>
    %64 = vector.broadcast %63 : vector<2x1x128xf32> to vector<2x16x128xf32>
    %65 = arith.mulf %60, %64 : vector<2x16x128xf32>
    %66 = vector.extract_strided_slice %11 {offsets = [0, 0, 2], sizes = [2, 16, 1], strides = [1, 1, 1]} : vector<2x16x4xf32> to vector<2x16x1xf32>
    %67 = vector.broadcast %66 : vector<2x16x1xf32> to vector<2x16x128xf32>
    %68 = arith.mulf %65, %67 : vector<2x16x128xf32>
    %cst_20 = arith.constant dense<0.000000e+00> : vector<2x128xf32>
    %69 = vector.multi_reduction <add>, %68, %cst_20 [1] : vector<2x16x128xf32> to vector<2x128xf32>
    %70 = arith.addf %51, %69 : vector<2x128xf32>
    %71 = vector.extract_strided_slice %9 {offsets = [0, 96], sizes = [32, 32], strides = [1, 1]} : vector<32x128xbf16> to vector<32x32xbf16>
    %72 = vector.extract_strided_slice %12 {offsets = [96, 0], sizes = [32, 128], strides = [1, 1]} : vector<128x128xbf16> to vector<32x128xbf16>
    %cst_21 = arith.constant dense<0.000000e+00> : vector<32x128xf32>
    %73 = tpu.matmul %71, %72, %cst_21 {dimension_numbers = #tpu.dot_dimension_numbers<[1], [0], [0], [1], [0, 0, 1, 1], [], []>} : vector<32x32xbf16>, vector<32x128xbf16>, vector<32x128xf32> -> vector<32x128xf32>
    %74 = vector.shape_cast %73 : vector<32x128xf32> to vector<2x16x128xf32>
    %cst_22 = arith.constant dense<0xFF800000> : vector<2x128xf32>
    %75 = vector.multi_reduction <maximumf>, %74, %cst_22 [1] : vector<2x16x128xf32> to vector<2x128xf32>
    %76 = vector.shape_cast %75 : vector<2x128xf32> to vector<2x1x128xf32>
    %77 = vector.broadcast %76 : vector<2x1x128xf32> to vector<2x16x128xf32>
    %78 = arith.subf %74, %77 : vector<2x16x128xf32>
    %79 = math.exp %78 : vector<2x16x128xf32>
    %cst_23 = arith.constant dense<0.000000e+00> : vector<2x128xf32>
    %80 = vector.multi_reduction <add>, %79, %cst_23 [1] : vector<2x16x128xf32> to vector<2x128xf32>
    %81 = vector.shape_cast %80 : vector<2x128xf32> to vector<2x1x128xf32>
    %82 = tpu.reciprocal %81 {approx = true} : vector<2x1x128xf32> -> vector<2x1x128xf32>
    %83 = vector.broadcast %82 : vector<2x1x128xf32> to vector<2x16x128xf32>
    %84 = arith.mulf %79, %83 : vector<2x16x128xf32>
    %85 = vector.extract_strided_slice %11 {offsets = [0, 0, 3], sizes = [2, 16, 1], strides = [1, 1, 1]} : vector<2x16x4xf32> to vector<2x16x1xf32>
    %86 = vector.broadcast %85 : vector<2x16x1xf32> to vector<2x16x128xf32>
    %87 = arith.mulf %84, %86 : vector<2x16x128xf32>
    %cst_24 = arith.constant dense<0.000000e+00> : vector<2x128xf32>
    %88 = vector.multi_reduction <add>, %87, %cst_24 [1] : vector<2x16x128xf32> to vector<2x128xf32>
    %89 = arith.addf %70, %88 : vector<2x128xf32>
    %cst_25 = arith.constant dense<0xFF800000> : vector<2xf32>
    %90 = vector.multi_reduction <maximumf>, %89, %cst_25 [1] : vector<2x128xf32> to vector<2xf32>
    %91 = vector.shape_cast %90 : vector<2xf32> to vector<2x1xf32>
    %92 = vector.broadcast %91 : vector<2x1xf32> to vector<2x128xf32>
    %93 = arith.subf %89, %92 : vector<2x128xf32>
    %94 = math.exp %93 : vector<2x128xf32>
    %cst_26 = arith.constant dense<0.000000e+00> : vector<2xf32>
    %95 = vector.multi_reduction <add>, %94, %cst_26 [1] : vector<2x128xf32> to vector<2xf32>
    %96 = vector.shape_cast %95 : vector<2xf32> to vector<2x1xf32>
    %97 = tpu.reciprocal %96 : vector<2x1xf32> -> vector<2x1xf32>
    %98 = vector.broadcast %97 : vector<2x1xf32> to vector<2x128xf32>
    %99 = arith.mulf %94, %98 : vector<2x128xf32>
    %c0_27 = arith.constant 0 : index
    %c0_28 = arith.constant 0 : index
    %100 = vector.load %arg4[%c0_27, %c0_28] : memref<2x128xf32, #tpu.memory_space<vmem>>, vector<2x128xf32>
    tpu.vector_store %arg4[%c0_27, %c0_28], %99 {strides = array<i32>} : memref<2x128xf32, #tpu.memory_space<vmem>>, vector<2x128xf32>,
    return
  }
}

</mosaic_0001>

<bundles_post_ra>
// kernel: tpu_custom_call.1
= control target key start
LH: loop header
LB: loop body
LE: loop exit
PB: predicated region body
PF: predicated region fallthrough
CT: control target
= control target key end

     0   :  { %9 = vsyncpa [#allocation3], 0  ;;  %s1364_s0 = inlined_call_operand.hbm [shape: f32[2,16,128], index: 0, kind: input, shape index: {}]   ;;  %s1365_s1 = inlined_call_operand.hbm [shape: bf16[128,128], index: 1, kind: input, shape index: {}]   ;;  %s1366_s2 = inlined_call_operand.hbm [shape: bf16[128,256], index: 2, kind: input, shape index: {}]   ;;  %s1367_s3 = inlined_call_operand.vmem [shape: f32[1,256], index: 3, kind: input, shape index: {}]   ;;  %s1368_s4 = inlined_call_operand.hbm [shape: f32[2,128], index: 4, kind: output, shape index: {}]  }
   0x1   :  { %10 = vsyncpa [#allocation6], 0 }
   0x2   :  { %11 = vsyncpa [#allocation4], 0  ;;  %s1198_s15 = smov [#allocation5]   ;;  %s1104_s19 = scalar_lea.hbm %s1365_s1, 1024 }
   0x3   :  { %s29_s16 = sshll.u32 %s1198_s15, 4  ;;  %p1105_p0 = scmp.ne.s32.totalorder %s1365_s1, %s1104_s19  ;;  %s30_s16 = int_to_ptr.vmem [resolvable:$true] %s29_s16 }
   0x4   :  { %p1108_p1 = scmp.lt.u32.totalorder %s1104_s19, %s1365_s1 }
   0x6   :  { %p1110_p2 = pnand %p1108_p1, %p1105_p0 }
   0x8   :  { %1113 = shalt.err (!%p1110_p2)
}
   0x9   :  { %s1114_s24 = scalar_lea.vmem %s30_s16, 1024  ;;  %p1119_p4 = scmp.lt.s32.totalorder %s30_s16, %s30_s16 }
   0xa   :  { %p1115_p3 = scmp.ne.s32.totalorder %s30_s16, %s1114_s24  ;;  %p1120_p5 = scmp.lt.s32.totalorder %s1114_s24, %s1114_s24 }
   0xc   :  { %p1121_p6 = por %p1120_p5, %p1119_p4 }
   0xe   :  { %p1122_p7 = pnand %p1121_p6, %p1115_p3 }
  0x10   :  { %1125 = shalt.err (!%p1122_p7)
}
  0x11   :  { %s1199_s25 = smov 64   ;;  %s1200_s26 = smov 4  }
  0x12   :  { %35 = dma.hbm_to_vmem [thread:$0]  %s1365_s1, 1024, %s30_s16, [#allocation6], %s1199_s25, %s1199_s25, %s1200_s26  }
  0x13   :  { %s1201_s29 = smov [#allocation2]   ;;  %s1126_s7 = scalar_lea.hbm %s1364_s0, 512 }
  0x14   :  { %s17_s30 = sshll.u32 %s1201_s29, 4  ;;  %p1127_p8 = scmp.ne.s32.totalorder %s1364_s0, %s1126_s7  ;;  %s18_s30 = int_to_ptr.vmem [resolvable:$true] %s17_s30 }
  0x15   :  { %p1130_p9 = scmp.lt.u32.totalorder %s1126_s7, %s1364_s0 }
  0x17   :  { %p1132_p10 = pnand %p1130_p9, %p1127_p8 }
  0x19   :  { %1135 = shalt.err (!%p1132_p10)
}
  0x1a   :  { %s1136_s12 = scalar_lea.vmem %s18_s30, 512  ;;  %p1141_p12 = scmp.lt.s32.totalorder %s18_s30, %s18_s30 }
  0x1b   :  { %p1137_p11 = scmp.ne.s32.totalorder %s18_s30, %s1136_s12  ;;  %p1142_p13 = scmp.lt.s32.totalorder %s1136_s12, %s1136_s12 }
  0x1d   :  { %p1143_p0 = por %p1142_p13, %p1141_p12 }
  0x1f   :  { %p1144_p1 = pnand %p1143_p0, %p1137_p11 }
  0x21   :  { %1147 = shalt.err (!%p1144_p1)
}
  0x22   :  { %s1202_s1 = smov 128   ;;  %s1203_s13 = smov 8  }
  0x23   :  { %23 = dma.hbm_to_vmem [thread:$0]  %s1364_s0, 512, %s18_s30, [#allocation3], %s1202_s1, %s1202_s1, %s1203_s13  }
  0x24   :  { %s1204_s16 = smov [#allocation7]   ;;  %s1148_s20 = scalar_lea.hbm %s1366_s2, 2048 }
  0x25   :  { %s41_s17 = sshll.u32 %s1204_s16, 4  ;;  %p1149_p2 = scmp.ne.s32.totalorder %s1366_s2, %s1148_s20  ;;  %s42_s17 = int_to_ptr.vmem [resolvable:$true] %s41_s17 }
  0x26   :  { %p1152_p3 = scmp.lt.u32.totalorder %s1148_s20, %s1366_s2 }
  0x28   :  { %p1154_p4 = pnand %p1152_p3, %p1149_p2 }
  0x2a   :  { %1157 = shalt.err (!%p1154_p4)
}
  0x2b   :  { %s1158_s26 = scalar_lea.vmem %s42_s17, 2048  ;;  %p1163_p6 = scmp.lt.s32.totalorder %s42_s17, %s42_s17 }
  0x2c   :  { %p1159_p5 = scmp.ne.s32.totalorder %s42_s17, %s1158_s26  ;;  %p1164_p7 = scmp.lt.s32.totalorder %s1158_s26, %s1158_s26 }
  0x2e   :  { %p1165_p8 = por %p1164_p7, %p1163_p6 }
  0x30   :  { %p1166_p9 = pnand %p1165_p8, %p1159_p5 }
  0x32   :  { %1169 = shalt.err (!%p1166_p9)
}
  0x33   :  { %47 = dma.hbm_to_vmem [thread:$0]  %s1366_s2, 2048, %s42_s17, [#allocation6], %s1202_s1, %s1202_s1, %s1203_s13  }
  0x34   :  { %1192 = dma.done.wait [#allocation3], 512  }
  0x35   :  { %1193 = vsyncadd [#allocation3], 4294966784 }
  0x36   :  { %1194 = dma.done.wait [#allocation6], 3072  }
  0x37   :  { %1195 = vsyncadd [#allocation6], 4294964224  ;;  %v1205_v0 = vmov 0   ;;  %v1018_v1 = vld [vmem:[#allocation7 + $0x4] ss:$8 sps:$4 sm:$0xff]   ;;  %v62_v20 = vld [vmem:[#allocation2 + $0x10] sm:$0xff]  ;;  %v84_v26 = vlaneseq }
  0x38   :  { %206 = vmatprep.mubr.bf16.mxu0 %v1205_v0  ;;  %1011 = vset.pattern.permute.xlu1 %v1205_v0  ;;  %v1020_v2 = vld [vmem:[#allocation7] ss:$8 sps:$4 sm:$0xff]   ;;  %v1021_v3 = vld [vmem:[#allocation7 + $0x14] ss:$8 sps:$4 sm:$0xff]   ;;  %v1023_v4 = vld [vmem:[#allocation7 + $0x10] ss:$8 sps:$4 sm:$0xff]  }
  0x39   :  { %1010 = vset.pattern.permute.xlu0 %v1205_v0  ;;  %174 = vmatprep.subr.bf16.mxu0 %v1018_v1  ;;  %v1024_v5 = vld [vmem:[#allocation7 + $0x24] ss:$8 sps:$4 sm:$0xff]   ;;  %v1026_v6 = vld [vmem:[#allocation7 + $0x20] ss:$8 sps:$4 sm:$0xff]   ;;  %v1027_v7 = vld [vmem:[#allocation7 + $0x34] ss:$8 sps:$4 sm:$0xff]  }
  0x3a   :  { %175 = vmatpush1.bf16.msra.mxu0 %v1020_v2  ;;  %v1029_v8 = vld [vmem:[#allocation7 + $0x30] ss:$8 sps:$4 sm:$0xff]   ;;  %v1030_v9 = vld [vmem:[#allocation7 + $0x44] ss:$8 sps:$4 sm:$0xff]   ;;  %v1032_v10 = vld [vmem:[#allocation7 + $0x40] ss:$8 sps:$4 sm:$0xff]  }
  0x3b   :  { %176 = vmatprep.subr.bf16.mxu0 %v1021_v3  ;;  %v1033_v11 = vld [vmem:[#allocation7 + $0x54] ss:$8 sps:$4 sm:$0xff]   ;;  %v1035_v12 = vld [vmem:[#allocation7 + $0x50] ss:$8 sps:$4 sm:$0xff]   ;;  %v1036_v13 = vld [vmem:[#allocation7 + $0x64] ss:$8 sps:$4 sm:$0xff]  }
  0x3c   :  { %v1038_v14 = vld [vmem:[#allocation7 + $0x60] ss:$8 sps:$4 sm:$0xff]   ;;  %v1039_v15 = vld [vmem:[#allocation7 + $0x74] ss:$8 sps:$4 sm:$0xff]   ;;  %v1041_v16 = vld [vmem:[#allocation7 + $0x70] ss:$8 sps:$4 sm:$0xff]  }
  0x3d   :  { %v60_v17 = vld [vmem:[#allocation2] sm:$0xff]  ;;  %v61_v18 = vld [vmem:[#allocation2 + $0x8] sm:$0xff]  ;;  %v63_v21 = vld [vmem:[#allocation2 + $0x18] sm:$0xff]  ;;  %v85_v27 = vshrl.u32 %v84_v26, 7  ;;  %vm257_vm0 = vcmask 261120   ;;  %s1206_s29 = smov 96  }
  0x3e   :  { %177 = vmatpush1.bf16.msra.mxu0 %v1023_v4  ;;  %v64_v19 = vpack.c.bf16 %v61_v18, %v60_v17  ;;  %v65_v22 = vpack.c.bf16 %v63_v21, %v62_v20  ;;  %v1042_v23 = vld [vmem:[#allocation5] sm:$0xff]   ;;  %v1043_v24 = vld [vmem:[#allocation5 + $0x8] sm:$0xff]   ;;  %v1044_v25 = vld [vmem:[#allocation5 + $0x10] sm:$0xff]   ;;  %v1208_v53 = vmov 1   ;;  %v1209_v54 = vmov 2  }
  0x3f   :  { %178 = vmatprep.subr.bf16.mxu0 %v1024_v5  ;;  %964 = vmatprep.subr.bf16.mxu1 %v1042_v23  ;;  %v86_v28 = vsub.s32 0, %v85_v27  ;;  %v82_v29 = vld [vmem:[%s1367_s3] sm:$0x3]  ;;  %v90_v44 = vsub.s32 1, %v85_v27  ;;  %v1045_v46 = vld [vmem:[#allocation5 + $0x18] sm:$0xff]   ;;  %s1207_s3 = smov 32  }
  0x40   :  { %965 = vmatpush3.bf16.msra.mxu1 %v1042_v23  ;;  %v1046_v48 = vld [vmem:[#allocation5 + $0x20] sm:$0xff]   ;;  %v1210_v55 = vmov 3   ;;  %v1047_v57 = vld [vmem:[#allocation5 + $0x28] sm:$0xff]   ;;  %v1048_v60 = vld [vmem:[#allocation5 + $0x30] sm:$0xff]   ;;  %vm862_vm1 = vcmask 1041409   ;;  %vm865_vm2 = vcmask 1041408  }
  0x41   :  { %966 = vmatprep.subr.bf16.mxu1 %v1043_v24  ;;  %v87_v30 = vrot.slane %v82_v29, %v86_v28  ;;  %v91_v47 = vrot.slane %v82_v29, %v90_v44  ;;  %v1049_v61 = vld [vmem:[#allocation5 + $0x38] sm:$0xff]  }
  0x42   :  { %179 = vmatpush1.bf16.msra.mxu0 %v1026_v6 }
  0x43   :  { %180 = vmatprep.subr.bf16.mxu0 %v1027_v7 }
  0x44   :  { %967 = vmatpush3.bf16.msra.mxu1 %v1043_v24 }
  0x45   :  { %972 = vmatprep.subr.bf16.mxu1 %v1044_v25 }
  0x46   :  { %181 = vmatpush1.bf16.msra.mxu0 %v1029_v8 }
  0x47   :  { %182 = vmatprep.subr.bf16.mxu0 %v1030_v9 }
  0x4a   :  { %183 = vmatpush1.bf16.msra.mxu0 %v1032_v10 }
  0x4b   :  { %184 = vmatprep.subr.bf16.mxu0 %v1033_v11 }
  0x4e   :  { %185 = vmatpush1.bf16.msra.mxu0 %v1035_v12 }
  0x4f   :  { %186 = vmatprep.subr.bf16.mxu0 %v1036_v13 }
  0x52   :  { %187 = vmatpush1.bf16.msra.mxu0 %v1038_v14 }
  0x53   :  { %188 = vmatprep.subr.bf16.mxu0 %v1039_v15 }
  0x56   :  { %189 = vmatpush1.bf16.msra.mxu0 %v1041_v16 }
  0x59   :  { %207 = vmatmul.mubr.bf16.vlgmr.msra.gmra.mrb[0].mxu0 %v64_v19 }
  0x5a   :  { %216 = vmatprep.mubr.bf16.mxu0 %v1205_v0 }
  0x61   :  { %217 = vmatmul.mubr.bf16.gmra.mrb[4].mxu0 %v65_v22 }
 0x12c   :  { %v208_v31 = vpop.f32.mrb[0].mxu0 }
 0x12d   :  { %v210_v32 = vpop.f32.mrb[1].mxu0  ;;  %v209_v34 = vadd.f32 %v208_v31, %v87_v30 }
 0x12e   :  { %v212_v33 = vpop.f32.mrb[2].mxu0  ;;  %v211_v49 = vadd.f32 %v210_v32, %v91_v47 }
 0x12f   :  { %v213_v35 = vadd.f32 %v212_v33, %v87_v30  ;;  %v214_v36 = vpop.f32.mrb[3].mxu0 }
 0x130   :  { %v215_v50 = vadd.f32 %v214_v36, %v91_v47 }
 0x131   :  { %v227_v37 = vpack.c.bf16 %v213_v35, %v209_v34 }
 0x133   :  { %554 = vrot.lane.b32.xlu1 %v227_v37, %s1199_s25  ;;  %401 = vrot.lane.b32.xlu0 %v227_v37, %s1206_s29 }
 0x134   :  { %968 = vmatprep.mubr.msk.bf16.mxu1 %vm257_vm0, %v227_v37  ;;  %v218_v38 = vpop.f32.mrb[4].mxu0 }
 0x135   :  { %v220_v39 = vpop.f32.mrb[5].mxu0  ;;  %v219_v41 = vadd.f32 %v218_v38, %v87_v30 }
 0x136   :  { %v222_v40 = vpop.f32.mrb[6].mxu0  ;;  %v221_v51 = vadd.f32 %v220_v39, %v91_v47 }
 0x137   :  { %v223_v42 = vadd.f32 %v222_v40, %v87_v30  ;;  %v224_v43 = vpop.f32.mrb[7].mxu0 }
 0x138   :  { %v225_v52 = vadd.f32 %v224_v43, %v91_v47 }
 0x139   :  { %v228_v45 = vpack.c.bf16 %v223_v42, %v219_v41 }
 0x13b   :  { %556 = vrot.lane.b32.xlu1 %v228_v45, %s1199_s25  ;;  %403 = vrot.lane.b32.xlu0 %v228_v45, %s1206_s29  ;;  %s1211_s25 = smov [#allocation8]  }
 0x13c   :  { %969 = vmatmul.mubr.msk.bf16.vlgmr.msra.gmra.mrb[0].mxu1 %vm257_vm0, %v228_v45  ;;  %s906_s30 = sshll.u32 %s1211_s25, 4  ;;  %s907_s30 = int_to_ptr.vmem [resolvable:$true] %s906_s30 }
 0x13d   :  { %973 = vmatpush3.bf16.msra.mxu1 %v1044_v25  ;;  %s1170_s5 = scalar_lea.vmem %s907_s30, 32  ;;  %p1175_p11 = scmp.lt.s32.totalorder %s907_s30, %s907_s30 }
 0x13e   :  { %974 = vmatprep.subr.bf16.mxu1 %v1045_v46  ;;  %p1171_p10 = scmp.ne.s32.totalorder %s907_s30, %s1170_s5  ;;  %p1176_p12 = scmp.lt.s32.totalorder %s1170_s5, %s1170_s5 }
 0x13f   :  { %709 = vrot.lane.b32.xlu1 %v228_v45, %s1207_s3  ;;  %707 = vrot.lane.b32.xlu0 %v227_v37, %s1207_s3 }
 0x140   :  { %p1177_p13 = por %p1176_p12, %p1175_p11 }
 0x141   :  { %975 = vmatpush3.bf16.msra.mxu1 %v1045_v46 }
 0x142   :  { %980 = vmatprep.subr.bf16.mxu1 %v1046_v48  ;;  %p1178_p0 = pnand %p1177_p13, %p1171_p10 }
 0x143   :  { %366 = vperm.xlu1 %1011, %v215_v50   ;;  %361 = vperm.xlu0 %1010, %v211_v49  }
 0x147   :  { %371 = vperm.xlu1 %1011, %v221_v51   ;;  %376 = vperm.xlu0 %1010, %v225_v52  }
 0x14b   :  { %1012 = vset.pattern.permute.xlu1 %v1208_v53  ;;  %1013 = vset.pattern.permute.xlu0 %v1208_v53 }
 0x14c   :  { %519 = vperm.xlu1 %1012, %v211_v49   ;;  %523 = vperm.xlu0 %1013, %v215_v50  }
 0x150   :  { %527 = vperm.xlu1 %1012, %v221_v51   ;;  %1014 = vset.pattern.permute.xlu0 %v1209_v54 }
 0x151   :  { %672 = vperm.xlu0 %1014, %v211_v49  }
 0x154   :  { %531 = vperm.xlu1 %1012, %v225_v52  }
 0x155   :  { %684 = vperm.xlu0 %1014, %v225_v52  }
 0x158   :  { %1015 = vset.pattern.permute.xlu1 %v1209_v54 }
 0x159   :  { %676 = vperm.xlu1 %1015, %v215_v50   ;;  %1017 = vset.pattern.permute.xlu0 %v1210_v55 }
 0x15a   :  { %829 = vperm.xlu0 %1017, %v215_v50  }
 0x15d   :  { %680 = vperm.xlu1 %1015, %v221_v51  }
 0x161   :  { %1016 = vset.pattern.permute.xlu1 %v1210_v55 }
 0x162   :  { %825 = vperm.xlu1 %1016, %v211_v49  }
 0x166   :  { %833 = vperm.xlu1 %1016, %v221_v51  }
 0x16a   :  { %837 = vperm.xlu1 %1016, %v225_v52  }
 0x1a5   :  { %v402_v56 = vpop.permute.xlu0 %401  ;;  %v555_v59 = vpop.permute.xlu1 %554 }
 0x1a6   :  { %976 = vmatprep.mubr.msk.bf16.mxu1 %vm257_vm0, %v402_v56 }
 0x1ad   :  { %v404_v58 = vpop.permute.xlu0 %403  ;;  %v557_v62 = vpop.permute.xlu1 %556 }
 0x1ae   :  { %977 = vmatmul.mubr.msk.bf16.vlgmr.msra.gmra.mrb[4].mxu1 %vm257_vm0, %v404_v58 }
 0x1af   :  { %981 = vmatpush3.bf16.msra.mxu1 %v1046_v48  ;;  %984 = vmatprep.mubr.msk.bf16.mxu1 %vm257_vm0, %v555_v59 }
 0x1b0   :  { %982 = vmatprep.subr.bf16.mxu1 %v1047_v57 }
 0x1b1   :  { %v708_v63 = vpop.permute.xlu0 %707  ;;  %v710_v0 = vpop.permute.xlu1 %709 }
 0x1b3   :  { %983 = vmatpush3.bf16.msra.mxu1 %v1047_v57 }
 0x1b4   :  { %988 = vmatprep.subr.bf16.mxu1 %v1048_v60 }
 0x1b6   :  { %985 = vmatmul.mubr.msk.bf16.vlgmr.msra.gmra.mrb[8].mxu1 %vm257_vm0, %v557_v62 }
 0x1b7   :  { %989 = vmatpush3.bf16.msra.mxu1 %v1048_v60  ;;  %992 = vmatprep.mubr.msk.bf16.mxu1 %vm257_vm0, %v708_v63 }
 0x1b8   :  { %990 = vmatprep.subr.bf16.mxu1 %v1049_v61 }
 0x1bb   :  { %991 = vmatpush3.bf16.msra.mxu1 %v1049_v61 }
 0x1be   :  { %993 = vmatmul.mubr.msk.bf16.vlgmr.msra.gmra.mrb[12].mxu1 %vm257_vm0, %v710_v0 }
 0x1c2   :  { %v367_v45 = vpop.permute.xlu1 %366  ;;  %v362_v46 = vpop.permute.xlu0 %361 }
 0x1c6   :  { %v372_v51 = vpop.permute.xlu1 %371  ;;  %v377_v52 = vpop.permute.xlu0 %376 }
 0x20f   :  { %v970_v1 = vpop.f32.mrb[0].mxu1 }
 0x210   :  { %v298_v2 = vpop.f32.mrb[1].mxu1 }
 0x211   :  { %v971_v3 = vpop.f32.mrb[2].mxu1 }
 0x212   :  { %v320_v4 = vmax.f32 %v970_v1, %v971_v3  ;;  %v301_v5 = vpop.f32.mrb[3].mxu1 }
 0x213   :  { %v313_v6 = vmax.f32 %v298_v2, %v301_v5 }
 0x214   :  { %v321_v7 = vrot.slane %v320_v4, 4 }
 0x215   :  { %v314_v8 = vrot.slane %v313_v6, 4 }
 0x216   :  { %v322_v9 = vmax.f32 %v320_v4, %v321_v7 }
 0x217   :  { %v315_v10 = vmax.f32 %v313_v6, %v314_v8 }
 0x218   :  { %v323_v11 = vrot.slane %v322_v9, 2 }
 0x219   :  { %v316_v12 = vrot.slane %v315_v10, 2 }
 0x21a   :  { %v324_v13 = vmax.f32 %v322_v9, %v323_v11 }
 0x21b   :  { %v317_v14 = vmax.f32 %v315_v10, %v316_v12 }
 0x21c   :  { %v325_v15 = vrot.slane %v324_v13, 1 }
 0x21d   :  { %v318_v16 = vrot.slane %v317_v14, 1 }
 0x21e   :  { %v326_v17 = vmax.f32 %v324_v13, %v325_v15 }
 0x21f   :  { %v319_v18 = vmax.f32 %v317_v14, %v318_v16 }
 0x220   :  { %v329_v19 = vsub.f32 %v970_v1, %v326_v17  ;;  %v330_v20 = vsub.f32 %v971_v3, %v326_v17 }
 0x221   :  { %v327_v21 = vsub.f32 %v298_v2, %v319_v18  ;;  %v328_v22 = vsub.f32 %v301_v5, %v319_v18 }
 0x222   :  { %v335_v23 = vmul.f32 1.442695, %v329_v19  ;;  %v337_v24 = vmul.f32 1.442695, %v330_v20 }
 0x223   :  { %v331_v25 = vmul.f32 1.442695, %v327_v21  ;;  %v333_v26 = vmul.f32 1.442695, %v328_v22 }
 0x224   :  { %1050 = vpow2.f32 %v335_v23 }
 0x225   :  { %1052 = vpow2.f32 %v337_v24 }
 0x226   :  { %1054 = vpow2.f32 %v331_v25 }
 0x227   :  { %1056 = vpow2.f32 %v333_v26 }
 0x22e   :  { %v1051_v27 = vpop.eup %1050 }
 0x22f   :  { %v1053_v28 = vpop.eup %1052 }
 0x230   :  { %v1055_v29 = vpop.eup %1054  ;;  %v346_v30 = vadd.f32 %v1053_v28, %v1051_v27 }
 0x231   :  { %v1057_v31 = vpop.eup %1056 }
 0x232   :  { %v347_v32 = vrot.slane %v346_v30, 4  ;;  %v339_v33 = vadd.f32 %v1057_v31, %v1055_v29 }
 0x234   :  { %v348_v34 = vadd.f32 %v347_v32, %v346_v30  ;;  %v340_v35 = vrot.slane %v339_v33, 4 }
 0x236   :  { %v349_v36 = vrot.slane %v348_v34, 2  ;;  %v341_v37 = vadd.f32 %v340_v35, %v339_v33 }
 0x238   :  { %v350_v38 = vadd.f32 %v349_v36, %v348_v34  ;;  %v342_v39 = vrot.slane %v341_v37, 2 }
 0x23a   :  { %v351_v40 = vrot.slane %v350_v38, 1  ;;  %v343_v41 = vadd.f32 %v342_v39, %v341_v37 }
 0x23c   :  { %v352_v42 = vadd.f32 %v351_v40, %v350_v38  ;;  %v344_v43 = vrot.slane %v343_v41, 1 }
 0x23e   :  { %1058 = vrcp.f32 %v352_v42  ;;  %v345_v44 = vadd.f32 %v344_v43, %v343_v41 }
 0x240   :  { %1060 = vrcp.f32 %v345_v44 }
 0x248   :  { %v1059_v47 = vpop.eup %1058 }
 0x249   :  { %v357_v48 = vmul.f32 %v1059_v47, %v1051_v27  ;;  %v358_v49 = vmul.f32 %v1059_v47, %v1053_v28 }
 0x24a   :  { %v1061_v50 = vpop.eup %1060 }
 0x24b   :  { %v381_v53 = vmul.f32 %v372_v51, %v357_v48  ;;  %v382_v54 = vmul.f32 %v377_v52, %v358_v49  ;;  %v355_v55 = vmul.f32 %v1061_v50, %v1055_v29  ;;  %v356_v56 = vmul.f32 %v1061_v50, %v1057_v31 }
 0x24d   :  { %v1288_v57 = vadd.f32 %v382_v54, %v381_v53  ;;  %v379_v58 = vmul.f32 %v362_v46, %v355_v55  ;;  %v380_v59 = vmul.f32 %v367_v45, %v356_v56 }
 0x24f   :  { %v1290_v60 = vadd.f32 %v380_v59, %v379_v58 }
 0x281   :  { %v978_v61 = vpop.f32.mrb[4].mxu1 }
 0x282   :  { %v457_v62 = vpop.f32.mrb[5].mxu1 }
 0x283   :  { %v979_v63 = vpop.f32.mrb[6].mxu1 }
 0x284   :  { %v479_v0 = vmax.f32 %v978_v61, %v979_v63  ;;  %v460_v1 = vpop.f32.mrb[7].mxu1 }
 0x285   :  { %v472_v2 = vmax.f32 %v457_v62, %v460_v1 }
 0x286   :  { %v480_v3 = vrot.slane %v479_v0, 4 }
 0x287   :  { %v473_v4 = vrot.slane %v472_v2, 4 }
 0x288   :  { %v481_v5 = vmax.f32 %v479_v0, %v480_v3 }
 0x289   :  { %v474_v6 = vmax.f32 %v472_v2, %v473_v4  ;;  %v986_v7 = vpop.f32.mrb[8].mxu1 }
 0x28a   :  { %v482_v8 = vrot.slane %v481_v5, 2  ;;  %v610_v9 = vpop.f32.mrb[9].mxu1 }
 0x28b   :  { %v475_v10 = vrot.slane %v474_v6, 2  ;;  %v987_v11 = vpop.f32.mrb[10].mxu1 }
 0x28c   :  { %v483_v12 = vmax.f32 %v481_v5, %v482_v8  ;;  %v632_v13 = vmax.f32 %v986_v7, %v987_v11  ;;  %v613_v14 = vpop.f32.mrb[11].mxu1  ;;  %v1298_v8 = vpop.permute.xlu1 %519 }
 0x28d   :  { %v476_v15 = vmax.f32 %v474_v6, %v475_v10  ;;  %v625_v16 = vmax.f32 %v610_v9, %v613_v14 }
 0x28e   :  { %v484_v17 = vrot.slane %v483_v12, 1  ;;  %v633_v18 = vrot.slane %v632_v13, 4 }
 0x28f   :  { %v477_v19 = vrot.slane %v476_v15, 1  ;;  %v626_v20 = vrot.slane %v625_v16, 4 }
 0x290   :  { %v485_v21 = vmax.f32 %v483_v12, %v484_v17  ;;  %v634_v22 = vmax.f32 %v632_v13, %v633_v18 }
 0x291   :  { %v478_v23 = vmax.f32 %v476_v15, %v477_v19  ;;  %v627_v24 = vmax.f32 %v625_v16, %v626_v20  ;;  %v994_v25 = vpop.f32.mrb[12].mxu1 }
 0x292   :  { %v488_v26 = vsub.f32 %v978_v61, %v485_v21  ;;  %v489_v27 = vsub.f32 %v979_v63, %v485_v21  ;;  %v635_v28 = vrot.slane %v634_v22, 2  ;;  %v763_v29 = vpop.f32.mrb[13].mxu1 }
 0x293   :  { %v486_v30 = vsub.f32 %v457_v62, %v478_v23  ;;  %v487_v31 = vsub.f32 %v460_v1, %v478_v23  ;;  %v628_v32 = vrot.slane %v627_v24, 2  ;;  %v995_v33 = vpop.f32.mrb[14].mxu1 }
 0x294   :  { %v494_v34 = vmul.f32 1.442695, %v488_v26  ;;  %v496_v35 = vmul.f32 1.442695, %v489_v27  ;;  %v636_v36 = vmax.f32 %v634_v22, %v635_v28  ;;  %v785_v37 = vmax.f32 %v994_v25, %v995_v33  ;;  %v766_v38 = vpop.f32.mrb[15].mxu1 }
 0x295   :  { %v490_v39 = vmul.f32 1.442695, %v486_v30  ;;  %v492_v40 = vmul.f32 1.442695, %v487_v31  ;;  %v629_v41 = vmax.f32 %v627_v24, %v628_v32  ;;  %v778_v42 = vmax.f32 %v763_v29, %v766_v38  ;;  %v528_v24 = vpop.permute.xlu1 %527 }
 0x296   :  { %1062 = vpow2.f32 %v494_v34  ;;  %v637_v43 = vrot.slane %v636_v36, 1  ;;  %v786_v44 = vrot.slane %v785_v37, 4 }
 0x297   :  { %1064 = vpow2.f32 %v496_v35  ;;  %v630_v45 = vrot.slane %v629_v41, 1  ;;  %v779_v46 = vrot.slane %v778_v42, 4 }
 0x298   :  { %1066 = vpow2.f32 %v490_v39  ;;  %v638_v47 = vmax.f32 %v636_v36, %v637_v43  ;;  %v787_v48 = vmax.f32 %v785_v37, %v786_v44 }
 0x299   :  { %1068 = vpow2.f32 %v492_v40  ;;  %v631_v49 = vmax.f32 %v629_v41, %v630_v45  ;;  %v780_v50 = vmax.f32 %v778_v42, %v779_v46  ;;  %v532_v37 = vpop.permute.xlu1 %531 }
 0x29a   :  { %v641_v51 = vsub.f32 %v986_v7, %v638_v47  ;;  %v642_v52 = vsub.f32 %v987_v11, %v638_v47  ;;  %v788_v53 = vrot.slane %v787_v48, 2 }
 0x29b   :  { %v639_v54 = vsub.f32 %v610_v9, %v631_v49  ;;  %v640_v55 = vsub.f32 %v613_v14, %v631_v49  ;;  %v781_v56 = vrot.slane %v780_v50, 2 }
 0x29c   :  { %v647_v58 = vmul.f32 1.442695, %v641_v51  ;;  %v649_v59 = vmul.f32 1.442695, %v642_v52  ;;  %v789_v61 = vmax.f32 %v787_v48, %v788_v53 }
 0x29d   :  { %v643_v62 = vmul.f32 1.442695, %v639_v54  ;;  %v645_v63 = vmul.f32 1.442695, %v640_v55  ;;  %v782_v0 = vmax.f32 %v780_v50, %v781_v56  ;;  %v677_v52 = vpop.permute.xlu1 %676 }
 0x29e   :  { %1070 = vpow2.f32 %v647_v58  ;;  %v790_v1 = vrot.slane %v789_v61, 1 }
 0x29f   :  { %1072 = vpow2.f32 %v649_v59  ;;  %v783_v2 = vrot.slane %v782_v0, 1 }
 0x2a0   :  { %v1292_v3 = vpop.eup %1062  ;;  %1074 = vpow2.f32 %v643_v62  ;;  %v791_v4 = vmax.f32 %v789_v61, %v790_v1  ;;  %v524_v1 = vpop.permute.xlu0 %523 }
 0x2a1   :  { %v1294_v5 = vpop.eup %1064  ;;  %1076 = vpow2.f32 %v645_v63  ;;  %v784_v6 = vmax.f32 %v782_v0, %v783_v2  ;;  %v384_v63 = vrot.slane %v1290_v60, 4  ;;  %v391_v0 = vrot.slane %v1288_v57, 4 }
 0x2a2   :  { %v1296_v7 = vpop.eup %1066  ;;  %v505_v9 = vadd.f32 %v1294_v5, %v1292_v3  ;;  %v794_v10 = vsub.f32 %v994_v25, %v791_v4  ;;  %v795_v11 = vsub.f32 %v995_v33, %v791_v4 }
 0x2a3   :  { %v1302_v12 = vpop.eup %1068  ;;  %v792_v13 = vsub.f32 %v763_v29, %v784_v6  ;;  %v793_v14 = vsub.f32 %v766_v38, %v784_v6 }
 0x2a4   :  { %v506_v15 = vrot.slane %v505_v9, 4  ;;  %v498_v16 = vadd.f32 %v1302_v12, %v1296_v7  ;;  %v800_v17 = vmul.f32 1.442695, %v794_v10  ;;  %v802_v18 = vmul.f32 1.442695, %v795_v11  ;;  %v681_v10 = vpop.permute.xlu1 %680 }
 0x2a5   :  { %v796_v19 = vmul.f32 1.442695, %v792_v13  ;;  %v798_v20 = vmul.f32 1.442695, %v793_v14 }
 0x2a6   :  { %v507_v21 = vadd.f32 %v506_v15, %v505_v9  ;;  %v499_v22 = vrot.slane %v498_v16, 4  ;;  %1078 = vpow2.f32 %v800_v17 }
 0x2a7   :  { %1080 = vpow2.f32 %v802_v18 }
 0x2a8   :  { %v1306_v23 = vpop.eup %1070  ;;  %v508_v25 = vrot.slane %v507_v21, 2  ;;  %v500_v26 = vadd.f32 %v499_v22, %v498_v16  ;;  %1082 = vpow2.f32 %v796_v19  ;;  %v385_v19 = vadd.f32 %v384_v63, %v1290_v60 }
 0x2a9   :  { %v1308_v27 = vpop.eup %1072  ;;  %1084 = vpow2.f32 %v798_v20  ;;  %v392_v20 = vadd.f32 %v391_v0, %v1288_v57 }
 0x2aa   :  { %v1310_v28 = vpop.eup %1074  ;;  %v509_v29 = vadd.f32 %v508_v25, %v507_v21  ;;  %v501_v30 = vrot.slane %v500_v26, 2  ;;  %v658_v31 = vadd.f32 %v1308_v27, %v1306_v23 }
 0x2ab   :  { %v1314_v32 = vpop.eup %1076  ;;  %v393_v60 = vrot.slane %v392_v20, 2 }
 0x2ac   :  { %v510_v33 = vrot.slane %v509_v29, 1  ;;  %v502_v34 = vadd.f32 %v501_v30, %v500_v26  ;;  %v659_v35 = vrot.slane %v658_v31, 4  ;;  %v651_v36 = vadd.f32 %v1314_v32, %v1310_v28 }
 0x2ae   :  { %v511_v38 = vadd.f32 %v510_v33, %v509_v29  ;;  %v503_v39 = vrot.slane %v502_v34, 1  ;;  %v660_v40 = vadd.f32 %v659_v35, %v658_v31  ;;  %v652_v41 = vrot.slane %v651_v36, 4  ;;  %v673_v29 = vpop.permute.xlu0 %672 }
 0x2b0   :  { %v1318_v42 = vpop.eup %1078  ;;  %1086 = vrcp.f32 %v511_v38  ;;  %v504_v43 = vadd.f32 %v503_v39, %v502_v34  ;;  %v661_v44 = vrot.slane %v660_v40, 2  ;;  %v653_v45 = vadd.f32 %v652_v41, %v651_v36  ;;  %v826_v34 = vpop.permute.xlu1 %825 }
 0x2b1   :  { %v1320_v46 = vpop.eup %1080  ;;  %v386_v36 = vrot.slane %v385_v19, 2 }
 0x2b2   :  { %v1322_v47 = vpop.eup %1082  ;;  %1088 = vrcp.f32 %v504_v43  ;;  %v662_v48 = vadd.f32 %v661_v44, %v660_v40  ;;  %v654_v49 = vrot.slane %v653_v45, 2  ;;  %v811_v50 = vadd.f32 %v1320_v46, %v1318_v42  ;;  %v685_v41 = vpop.permute.xlu0 %684 }
 0x2b3   :  { %v1326_v51 = vpop.eup %1084  ;;  %v387_v43 = vadd.f32 %v386_v36, %v385_v19 }
 0x2b4   :  { %v663_v53 = vrot.slane %v662_v48, 1  ;;  %v655_v54 = vadd.f32 %v654_v49, %v653_v45  ;;  %v812_v55 = vrot.slane %v811_v50, 4  ;;  %v804_v56 = vadd.f32 %v1326_v51, %v1322_v47 }
 0x2b6   :  { %v664_v58 = vadd.f32 %v663_v53, %v662_v48  ;;  %v656_v59 = vrot.slane %v655_v54, 1  ;;  %v813_v61 = vadd.f32 %v812_v55, %v811_v50  ;;  %v805_v62 = vrot.slane %v804_v56, 4  ;;  %v834_v50 = vpop.permute.xlu1 %833  ;;  %v830_v19 = vpop.permute.xlu0 %829 }
 0x2b8   :  { %1090 = vrcp.f32 %v664_v58  ;;  %v657_v2 = vadd.f32 %v656_v59, %v655_v54  ;;  %v814_v4 = vrot.slane %v813_v61, 2  ;;  %v806_v6 = vadd.f32 %v805_v62, %v804_v56 }
 0x2b9   :  { %v388_v58 = vrot.slane %v387_v43, 1 }
 0x2ba   :  { %v1087_v9 = vpop.eup %1086  ;;  %1092 = vrcp.f32 %v657_v2  ;;  %v815_v11 = vadd.f32 %v814_v4, %v813_v61  ;;  %v807_v13 = vrot.slane %v806_v6, 2 }
 0x2bb   :  { %v516_v14 = vmul.f32 %v1087_v9, %v1292_v3  ;;  %v517_v15 = vmul.f32 %v1087_v9, %v1294_v5 }
 0x2bc   :  { %v1089_v16 = vpop.eup %1088  ;;  %v816_v17 = vrot.slane %v815_v11, 1  ;;  %v808_v18 = vadd.f32 %v807_v13, %v806_v6 }
 0x2bd   :  { %v536_v21 = vmul.f32 %v528_v24, %v516_v14  ;;  %v537_v22 = vmul.f32 %v532_v37, %v517_v15  ;;  %v514_v25 = vmul.f32 %v1089_v16, %v1296_v7  ;;  %v515_v26 = vmul.f32 %v1089_v16, %v1302_v12 }
 0x2be   :  { %v817_v30 = vadd.f32 %v816_v17, %v815_v11  ;;  %v809_v31 = vrot.slane %v808_v18, 1 }
 0x2bf   :  { %v545_v33 = vadd.f32 %v537_v22, %v536_v21  ;;  %v534_v3 = vmul.f32 %v1298_v8, %v514_v25  ;;  %v535_v5 = vmul.f32 %v524_v1, %v515_v26  ;;  %v394_v8 = vadd.f32 %v393_v60, %v392_v20 }
 0x2c0   :  { %1094 = vrcp.f32 %v817_v30  ;;  %v810_v35 = vadd.f32 %v809_v31, %v808_v18 }
 0x2c1   :  { %v538_v38 = vadd.f32 %v535_v5, %v534_v3  ;;  %v546_v57 = vrot.slane %v545_v33, 4 }
 0x2c2   :  { %v1091_v24 = vpop.eup %1090  ;;  %1096 = vrcp.f32 %v810_v35 }
 0x2c3   :  { %v669_v7 = vmul.f32 %v1091_v24, %v1306_v23  ;;  %v670_v12 = vmul.f32 %v1091_v24, %v1308_v27  ;;  %v539_v37 = vrot.slane %v538_v38, 4  ;;  %v547_v39 = vadd.f32 %v546_v57, %v545_v33 }
 0x2c4   :  { %v1093_v40 = vpop.eup %1092  ;;  %v395_v27 = vrot.slane %v394_v8, 1 }
 0x2c5   :  { %v690_v44 = vmul.f32 %v685_v41, %v670_v12  ;;  %v667_v45 = vmul.f32 %v1093_v40, %v1310_v28  ;;  %v668_v48 = vmul.f32 %v1093_v40, %v1314_v32  ;;  %v540_v49 = vadd.f32 %v539_v37, %v538_v38 }
 0x2c6   :  { %v548_v53 = vrot.slane %v547_v39, 2  ;;  %v689_v54 = vmul.f32 %v681_v10, %v669_v7  ;;  %v838_v10 = vpop.permute.xlu1 %837  ;;  %v396_v11 = vadd.f32 %v395_v27, %v394_v8 }
 0x2c7   :  { %v688_v55 = vmul.f32 %v677_v52, %v668_v48  ;;  %v541_v56 = vrot.slane %v540_v49, 2  ;;  %v687_v23 = vmul.f32 %v673_v29, %v667_v45  ;;  %v389_v52 = vadd.f32 %v388_v58, %v387_v43 }
 0x2c8   :  { %v549_v59 = vadd.f32 %v548_v53, %v547_v39  ;;  %v698_v61 = vadd.f32 %v690_v44, %v689_v54 }
 0x2c9   :  { %v542_v62 = vadd.f32 %v541_v56, %v540_v49  ;;  %v691_v63 = vadd.f32 %v688_v55, %v687_v23 }
 0x2ca   :  { %v1095_v0 = vpop.eup %1094  ;;  %v550_v1 = vrot.slane %v549_v59, 1  ;;  %v699_v2 = vrot.slane %v698_v61, 4 }
 0x2cb   :  { %v822_v28 = vmul.f32 %v1095_v0, %v1318_v42  ;;  %v823_v32 = vmul.f32 %v1095_v0, %v1320_v46  ;;  %v543_v4 = vrot.slane %v542_v62, 1  ;;  %v692_v6 = vrot.slane %v691_v63, 4 }
 0x2cc   :  { %v1097_v9 = vpop.eup %1096  ;;  %v551_v13 = vadd.f32 %v550_v1, %v549_v59  ;;  %v700_v14 = vadd.f32 %v699_v2, %v698_v61 }
 0x2cd   :  { %v843_v15 = vmul.f32 %v838_v10, %v823_v32  ;;  %v820_v16 = vmul.f32 %v1097_v9, %v1322_v47  ;;  %v821_v17 = vmul.f32 %v1097_v9, %v1326_v51  ;;  %v544_v18 = vadd.f32 %v543_v4, %v542_v62 }
 0x2ce   :  { %v553_v20 = vadd.f32 %v551_v13, %v396_v11  ;;  %v693_v21 = vadd.f32 %v692_v6, %v691_v63  ;;  %v701_v42 = vrot.slane %v700_v14, 2  ;;  %v842_v22 = vmul.f32 %v834_v50, %v822_v28 }
 0x2cf   :  { %v841_v46 = vmul.f32 %v830_v19, %v821_v17  ;;  %v552_v25 = vadd.f32 %v544_v18, %v389_v52  ;;  %v840_v26 = vmul.f32 %v826_v34, %v820_v16 }
 0x2d0   :  { %v694_v29 = vrot.slane %v693_v21, 2  ;;  %v702_v30 = vadd.f32 %v701_v42, %v700_v14  ;;  %v851_v31 = vadd.f32 %v843_v15, %v842_v22 }
 0x2d1   :  { %v844_v33 = vadd.f32 %v841_v46, %v840_v26 }
 0x2d2   :  { %v695_v3 = vadd.f32 %v694_v29, %v693_v21  ;;  %v703_v5 = vrot.slane %v702_v30, 1  ;;  %v852_v35 = vrot.slane %v851_v31, 4 }
 0x2d3   :  { %v845_v36 = vrot.slane %v844_v33, 4 }
 0x2d4   :  { %v696_v47 = vrot.slane %v695_v3, 1  ;;  %v704_v60 = vadd.f32 %v703_v5, %v702_v30  ;;  %v853_v51 = vadd.f32 %v852_v35, %v851_v31 }
 0x2d5   :  { %v846_v38 = vadd.f32 %v845_v36, %v844_v33 }
 0x2d6   :  { %v697_v57 = vadd.f32 %v696_v47, %v695_v3  ;;  %v706_v24 = vadd.f32 %v704_v60, %v553_v20  ;;  %v854_v7 = vrot.slane %v853_v51, 2 }
 0x2d7   :  { %v847_v12 = vrot.slane %v846_v38, 2 }
 0x2d8   :  { %v705_v37 = vadd.f32 %v697_v57, %v552_v25  ;;  %v855_v39 = vadd.f32 %v854_v7, %v853_v51 }
 0x2d9   :  { %v848_v40 = vadd.f32 %v847_v12, %v846_v38 }
 0x2da   :  { %v856_v34 = vrot.slane %v855_v39, 1 }
 0x2db   :  { %v849_v41 = vrot.slane %v848_v40, 1 }
 0x2dc   :  { %v857_v43 = vadd.f32 %v856_v34, %v855_v39 }
 0x2dd   :  { %v850_v8 = vadd.f32 %v849_v41, %v848_v40 }
 0x2de   :  { %v859_v44 = vadd.f32 %v857_v43, %v706_v24 }
 0x2df   :  { %v858_v45 = vadd.f32 %v850_v8, %v705_v37 }
 0x2e1   :  { %v863_v48 = vsel %vm862_vm1, %v859_v44, %v858_v45 }
 0x2e2   :  { %v866_v49 = vsel %vm865_vm2, %v863_v48, -inf }
 0x2e3   :  { %867 = vmax.xlane.f32.xlu0 %v866_v49 }
 0x370   :  { %v868_v50 = vpop.xlane.xlu0 %867 }
 0x371   :  { %v870_v53 = vrot.slane %v868_v50, 1  ;;  %v873_v54 = vsub.f32 %v858_v45, %v868_v50 }
 0x373   :  { %v874_v55 = vsub.f32 %v859_v44, %v870_v53  ;;  %v875_v56 = vmul.f32 1.442695, %v873_v54 }
 0x375   :  { %v877_v23 = vmul.f32 1.442695, %v874_v55 }
 0x377   :  { %1098 = vpow2.f32 %v877_v23 }
 0x378   :  { %1100 = vpow2.f32 %v875_v56 }
 0x381   :  { %v1099_v58 = vpop.eup %1098 }
 0x382   :  { %v881_v27 = vrot.slane %v1099_v58, 7  ;;  %v1101_v59 = vpop.eup %1100 }
 0x384   :  { %v882_v61 = vsel %vm862_vm1, %v881_v27, %v1101_v59 }
 0x385   :  { %v884_v62 = vsel %vm865_vm2, %v882_v61, 0.0 }
 0x386   :  { %885 = vadd.xlane.f32.xlu1 %v884_v62 }
 0x413   :  { %v886_v63 = vpop.xlane.xlu1 %885 }
 0x414   :  { %1102 = vrcp.f32 %v886_v63 }
 0x41e   :  { %v1103_v0 = vpop.eup %1102 }
 0x41f   :  { %v889_v1 = vrot.slane %v1103_v0, 1  ;;  %v892_v28 = vmul.f32 %v1103_v0, %v1101_v59 }
 0x421   :  { %v893_v2 = vmul.f32 %v1099_v58, %v889_v1 }
 0x423   :  { %v896_v32 = vrot.slane %v893_v2, 7 }
 0x425   :  { %v897_v4 = vsel %vm862_vm1, %v896_v32, %v892_v28 }
 0x426   :  { %899 = vst [vmem:[#allocation8] sm:$0x3] %v897_v4 }
 0x427   :  { %1181 = shalt.err (!%p1178_p0)
}
 0x428   :  { %s1182_s8 = scalar_lea.hbm %s1368_s4, 32 }
 0x429   :  { %p1183_p1 = scmp.ne.s32.totalorder %s1368_s4, %s1182_s8  ;;  %p1186_p2 = scmp.lt.u32.totalorder %s1182_s8, %s1368_s4 }
 0x42b   :  { %p1188_p3 = pnand %p1186_p2, %p1183_p1 }
 0x42d   :  { %1191 = shalt.err (!%p1188_p3)
}
 0x42e   :  { %909 = dma.vmem_to_hbm [thread:$0]  %s907_s30, 32, %s1368_s4, [#allocation4]  }
 0x42f   :  { %1196 = dma.done.wait [#allocation4], 32  }
 0x430   :  { %1197 = vsyncadd [#allocation4], 4294967264 }
 0x431   :  { %913 = vsyncpa [#allocation3], 1 }
 0x432   :  { %914 = vsyncpa [#allocation6], 1 }
 0x433   :  { %915 = vsyncpa [#allocation4], 1 }

</bundles_post_ra>
